<compile_context>
chip_gen: v5e
topology: v5e:2x2
jax: 0.10.0
libtpu: 0.0.40
codegen_flags: <defaults>
</compile_context>

<pallas_src>
import jax
import jax.numpy as jnp
from jax.experimental import pallas as pl
from jax.experimental.pallas import tpu as pltpu


# ----------------------------------------------------------------------------
# Kernel
# ----------------------------------------------------------------------------
def make_gnn_kernel(wl, bl):
    """wl: name -> (row_off, rows, cols) in the bf16 weight slab.
       bl: name -> (row, cols) in the f32 bias slab."""
    bf16 = jnp.bfloat16

    def kernel(a_ref, x_ref, gf_ref, w_ref, b_ref, out_ref):
        def mm(a, b):
            return jnp.dot(a, b, preferred_element_type=jnp.float32)

        def wt(name):                       # bf16 weight slice (static offsets)
            off, rows, cols = wl[name]
            return w_ref[off:off + rows, :cols]

        def bias(name):                     # f32 bias row -> (1, cols)
            row, cols = bl[name]
            return b_ref[row:row + 1, :cols]

        a = a_ref[0]                         # (N, N)   bf16
        x = x_ref[0]                         # (N, Fn)  bf16
        gf = gf_ref[0]                       # (G, Fg)  bf16

        # conv1 + ReLU :  A_hat @ (X @ W1) + b1
        h = mm(a, mm(x, wt("w1")).astype(bf16)) + bias("b1")        # f32 (N,16)
        h = jnp.maximum(h, 0.0).astype(bf16)
        # conv2 (no activation, matches PyTorch forward)
        h = (mm(a, mm(h, wt("w2")).astype(bf16)) + bias("b2")).astype(bf16)  # (N,32)
        # conv3
        h = mm(a, mm(h, wt("w3")).astype(bf16)) + bias("b3")        # f32 (N,32)

        # graph readout (mean over nodes) + folded fc1->fc2->fc_final[:,:128]
        g = jnp.mean(h, axis=0, keepdims=True).astype(bf16)         # (1,32)
        out_g = mm(g, wt("w_graph"))                                 # (1, OPAD) f32

        # global-feature branch
        gl = jnp.maximum(mm(gf, wt("wg")) + bias("bg"), 0.0).astype(bf16)     # (G,64)
        gl = jnp.maximum(mm(gl, wt("wf3")) + bias("bf3"), 0.0).astype(bf16)   # (G,128)
        gl = jnp.maximum(mm(gl, wt("wf4")) + bias("bf4"), 0.0).astype(bf16)   # (G,256)

        # fc_final on cat([graph.repeat(G,1), gl], 1)  ==  split matmul + broadcast
        out = mm(gl, wt("wfin_glob")) + out_g + bias("b_out")        # (G, OPAD) f32
        out_ref[0] = jnp.maximum(out, 0.0)                           # final ReLU

    return kernel


# ----------------------------------------------------------------------------
# Parameter handling
# ----------------------------------------------------------------------------
def make_params(key, num_node_features, num_global_features, num_output):
    """Deterministic synthetic parameters; weights stored (in, out), biases (1, out)."""
    shapes = {
        "w1": (num_node_features, 16), "b1": (1, 16),
        "w2": (16, 32), "b2": (1, 32),
        "w3": (32, 32), "b3": (1, 32),
        "wf1": (32, 64), "bf1": (1, 64),
        "wf2": (64, 128), "bf2": (1, 128),
        "wg": (num_global_features, 64), "bg": (1, 64),
        "wf3": (64, 128), "bf3": (1, 128),
        "wf4": (128, 256), "bf4": (1, 256),
        "wfin_graph": (128, num_output),   # first 128 cols of cat -> graph part
        "wfin_glob": (256, num_output),    # last 256 cols of cat -> global part
        "bfin": (1, num_output),
    }
    params = {}
    keys = jax.random.split(key, len(shapes))
    for k, (name, shp) in zip(keys, shapes.items()):
        params[name] = (0.1 * jax.random.normal(k, shp)).astype(jnp.float32)
    return params


def pack_params(p, num_output, opad, lanes):
    """Fold the activation-free graph branch, then pack weights (bf16) and
    biases (f32) into two contiguous slabs."""
    f32 = jnp.float32

    # Fold: g@wf1+bf1 ; @wf2+bf2 ; @wfin_graph  ->  g@W_graph + b_graph
    w_graph = p["wf1"] @ p["wf2"] @ p["wfin_graph"]                   # (32, O)
    b_graph = (p["bf1"] @ p["wf2"] + p["bf2"]) @ p["wfin_graph"]      # (1, O)
    b_out = b_graph + p["bfin"]                                       # (1, O)

    # Lane-pad output-producing weights/bias to OPAD for lane-dense stores.
    def pad_cols(a, cols):
        out = jnp.zeros((a.shape[0], cols), f32)
        return out.at[:, :a.shape[1]].set(a)

    w_graph_p = pad_cols(w_graph, opad)
    wfin_glob_p = pad_cols(p["wfin_glob"], opad)
    b_out_p = pad_cols(b_out, opad)

    weights = [
        ("w1", p["w1"]), ("w2", p["w2"]), ("w3", p["w3"]),
        ("w_graph", w_graph_p), ("wg", p["wg"]),
        ("wf3", p["wf3"]), ("wf4", p["wf4"]),
        ("wfin_glob", wfin_glob_p),
    ]
    wl, off = {}, 0
    for name, w in weights:
        rows, cols = w.shape
        wl[name] = (off, rows, cols)
        off += -(-rows // 16) * 16          # bf16 sublane-pack row alignment
    total_rows = -(-off // 16) * 16
    w_slab = jnp.zeros((total_rows, lanes), f32)
    for name, w in weights:
        o, rows, cols = wl[name]
        w_slab = w_slab.at[o:o + rows, :cols].set(w)
    w_slab = w_slab.astype(jnp.bfloat16)

    biases = [("b1", p["b1"]), ("b2", p["b2"]), ("b3", p["b3"]),
              ("bg", p["bg"]), ("bf3", p["bf3"]), ("bf4", p["bf4"]),
              ("b_out", b_out_p)]
    bl = {}
    b_slab = jnp.zeros((8, lanes), f32)
    for row, (name, b) in enumerate(biases):
        cols = b.shape[1]
        bl[name] = (row, cols)
        b_slab = b_slab.at[row, :cols].set(b[0])

    return w_slab, b_slab, wl, bl


# ----------------------------------------------------------------------------
# Graph preprocessing (plain-JAX glue)
# ----------------------------------------------------------------------------
def build_dense_gcn_adj(edge_index, num_nodes):
    """A_hat = D^{-1/2} (A + I) D^{-1/2}, A[dst, src] = 1 for each edge."""
    # TODO(synk): edge_index scatter -> dense A_hat stays in plain JAX; irregular
    # scatter has no clean tiny-Pallas equivalent, the matmul hot path is in-kernel.
    src, dst = edge_index[0], edge_index[1]
    adj = jnp.zeros((num_nodes, num_nodes), jnp.float32)
    adj = adj.at[dst, src].set(1.0)
    adj = adj + jnp.eye(num_nodes, dtype=jnp.float32)          # self loops
    deg = jnp.sum(adj, axis=1)
    dinv = jnp.where(deg > 0, 1.0 / jnp.sqrt(deg), 0.0)
    return dinv[:, None] * adj * dinv[None, :]


# ----------------------------------------------------------------------------
# Wrapper
# ----------------------------------------------------------------------------
def gnn_forward(a_hat_b, x, global_features, params, num_output):
    B, N, Fn = x.shape
    _, G, Fg = global_features.shape
    opad = -(-num_output // 128) * 128          # lane-dense output width
    lanes = max(256, opad)

    w_slab, b_slab, wl, bl = pack_params(params, num_output, opad, lanes)
    kernel = make_gnn_kernel(wl, bl)
    rw = w_slab.shape[0]

    a_bf = a_hat_b.astype(jnp.bfloat16)
    x_bf = x.astype(jnp.bfloat16)
    gf_bf = global_features.astype(jnp.bfloat16)

    out_padded = pl.pallas_call(
        kernel,
        out_shape=jax.ShapeDtypeStruct((B, G, opad), jnp.float32),
        grid_spec=pltpu.PrefetchScalarGridSpec(
            num_scalar_prefetch=0,
            grid=(B,),
            in_specs=[
                pl.BlockSpec((1, N, N), lambda b: (b, 0, 0)),      # A_hat  (per graph)
                pl.BlockSpec((1, N, Fn), lambda b: (b, 0, 0)),     # x      (per graph)
                pl.BlockSpec((1, G, Fg), lambda b: (b, 0, 0)),     # global (per graph)
                pl.BlockSpec((rw, lanes), lambda b: (0, 0)),       # weight slab (resident)
                pl.BlockSpec((8, lanes), lambda b: (0, 0)),        # bias slab   (resident)
            ],
            out_specs=pl.BlockSpec((1, G, opad), lambda b: (b, 0, 0)),
        ),
        compiler_params=pltpu.CompilerParams(
            dimension_semantics=("parallel",),
            vmem_limit_bytes=32 << 20,
        ),
    )(a_bf, x_bf, gf_bf, w_slab, b_slab)

    return out_padded[..., :num_output]


# ----------------------------------------------------------------------------
# Pure-JAX f32 reference (unfolded, mirrors the PyTorch forward)
# ----------------------------------------------------------------------------
def reference_forward(a_hat_b, x, gf, p):
    def one(a, xb, gb):
        h = jnp.maximum(a @ (xb @ p["w1"]) + p["b1"], 0.0)
        h = a @ (h @ p["w2"]) + p["b2"]
        h = a @ (h @ p["w3"]) + p["b3"]
        g = jnp.mean(h, axis=0, keepdims=True)
        g = g @ p["wf1"] + p["bf1"]
        g = g @ p["wf2"] + p["bf2"]
        gl = jnp.maximum(gb @ p["wg"] + p["bg"], 0.0)
        gl = jnp.maximum(gl @ p["wf3"] + p["bf3"], 0.0)
        gl = jnp.maximum(gl @ p["wf4"] + p["bf4"], 0.0)
        out = g @ p["wfin_graph"] + gl @ p["wfin_glob"] + p["bfin"]
        return jnp.maximum(out, 0.0)
    return jax.vmap(one)(a_hat_b, x, gf)


# ----------------------------------------------------------------------------
if __name__ == "__main__":
    num_node_features = 4
    num_global_features = 8
    num_output = 10
    N = 16    # nodes per graph
    G = 2     # rows of global features per graph (global_features.size(0))
    B = 8     # graphs batched per pallas_call

    key = jax.random.PRNGKey(0)
    k_params, k_x, k_gf = jax.random.split(key, 3)

    params = make_params(k_params, num_node_features, num_global_features, num_output)

    x = jax.random.normal(k_x, (B, N, num_node_features), dtype=jnp.float32)
    global_features = jax.random.normal(
        k_gf, (B, G, num_global_features), dtype=jnp.float32)

    # deterministic undirected ring graph, same structure for every batch element
    src = jnp.arange(N, dtype=jnp.int32)
    dst = (src + 1) % N
    edge_index = jnp.stack([jnp.concatenate([src, dst]),
                            jnp.concatenate([dst, src])], axis=0)   # (2, 2N)
    a_hat = build_dense_gcn_adj(edge_index, N)                      # (N, N)
    a_hat_b = jnp.broadcast_to(a_hat, (B, N, N))

    out = gnn_forward(a_hat_b, x, global_features, params, num_output)
    out = jax.block_until_ready(out)
    assert out.shape == (B, G, num_output)

    # loose tolerance: kernel uses bf16 MXU operands, reference is f32
    ref = reference_forward(a_hat_b, x, global_features, params)
    assert jnp.allclose(out, ref, atol=0.1, rtol=0.1), float(jnp.max(jnp.abs(out - ref)))

    print("KERNEL_OK")
</pallas_src>

<mosaic_0001>
module attributes {stable_mosaic.version = 11 : i64} {
  func.func @kernel(%arg0: i32, %arg1: memref<1x16x16xbf16, #tpu.memory_space<vmem>>, %arg2: memref<1x16x4xbf16, #tpu.memory_space<vmem>>, %arg3: memref<1x2x8xbf16, #tpu.memory_space<vmem>>, %arg4: memref<560x256xbf16, #tpu.memory_space<vmem>>, %arg5: memref<8x256xf32, #tpu.memory_space<vmem>>, %arg6: memref<1x2x128xf32, #tpu.memory_space<vmem>>) attributes {dimension_semantics = [#tpu.dimension_semantics<parallel>], iteration_bounds = array<i64: 8>, scalar_prefetch = 0 : i64, scratch_operands = 0 : i64, tpu.core_type = #tpu.core_type<tc>, window_params = [{transform_indices = @transform_0, window_bounds = array<i64: 1, 16, 16>}, {transform_indices = @transform_1, window_bounds = array<i64: 1, 16, 4>}, {transform_indices = @transform_2, window_bounds = array<i64: 1, 2, 8>}, {pipeline_mode = #tpu.pipeline_mode<synchronous>, transform_indices = @transform_3, window_bounds = array<i64: 560, 256>}, {pipeline_mode = #tpu.pipeline_mode<synchronous>, transform_indices = @transform_4, window_bounds = array<i64: 8, 256>}, {transform_indices = @transform_5, window_bounds = array<i64: 1, 2, 128>}]} {
    %c0 = arith.constant 0 : index
    %c0_0 = arith.constant 0 : index
    %c0_1 = arith.constant 0 : index
    %0 = vector.load %arg1[%c0, %c0_0, %c0_1] : memref<1x16x16xbf16, #tpu.memory_space<vmem>>, vector<1x16x16xbf16>
    %1 = vector.shape_cast %0 : vector<1x16x16xbf16> to vector<16x16xbf16>
    %c0_2 = arith.constant 0 : index
    %c0_3 = arith.constant 0 : index
    %c0_4 = arith.constant 0 : index
    %2 = vector.load %arg2[%c0_2, %c0_3, %c0_4] : memref<1x16x4xbf16, #tpu.memory_space<vmem>>, vector<1x16x4xbf16>
    %3 = vector.shape_cast %2 : vector<1x16x4xbf16> to vector<16x4xbf16>
    %c0_5 = arith.constant 0 : index
    %c0_6 = arith.constant 0 : index
    %c0_7 = arith.constant 0 : index
    %4 = vector.load %arg3[%c0_5, %c0_6, %c0_7] : memref<1x2x8xbf16, #tpu.memory_space<vmem>>, vector<1x2x8xbf16>
    %5 = vector.shape_cast %4 : vector<1x2x8xbf16> to vector<2x8xbf16>
    %c0_8 = arith.constant 0 : index
    %c0_9 = arith.constant 0 : index
    %6 = vector.load %arg4[%c0_8, %c0_9] : memref<560x256xbf16, #tpu.memory_space<vmem>>, vector<4x16xbf16>
    %cst = arith.constant dense<0.000000e+00> : vector<16x16xf32>
    %7 = tpu.matmul %3, %6, %cst {dimension_numbers = #tpu.dot_dimension_numbers<[1], [0], [0], [1], [0, 0, 1, 1], [], []>} : vector<16x4xbf16>, vector<4x16xbf16>, vector<16x16xf32> -> vector<16x16xf32>
    %8 = arith.truncf %7 : vector<16x16xf32> to vector<16x16xbf16>
    %cst_10 = arith.constant dense<0.000000e+00> : vector<16x16xf32>
    %9 = tpu.matmul %1, %8, %cst_10 {dimension_numbers = #tpu.dot_dimension_numbers<[1], [0], [0], [1], [0, 0, 1, 1], [], []>} : vector<16x16xbf16>, vector<16x16xbf16>, vector<16x16xf32> -> vector<16x16xf32>
    %c0_11 = arith.constant 0 : index
    %c0_12 = arith.constant 0 : index
    %10 = vector.load %arg5[%c0_11, %c0_12] : memref<8x256xf32, #tpu.memory_space<vmem>>, vector<1x16xf32>
    %11 = vector.broadcast %10 : vector<1x16xf32> to vector<16x16xf32>
    %12 = arith.addf %9, %11 : vector<16x16xf32>
    %cst_13 = arith.constant 0.000000e+00 : f32
    %13 = vector.broadcast %cst_13 : f32 to vector<16x16xf32>
    %14 = arith.maximumf %12, %13 : vector<16x16xf32>
    %15 = arith.truncf %14 : vector<16x16xf32> to vector<16x16xbf16>
    %c16 = arith.constant 16 : index
    %c0_14 = arith.constant 0 : index
    %16 = vector.load %arg4[%c16, %c0_14] : memref<560x256xbf16, #tpu.memory_space<vmem>>, vector<16x32xbf16>
    %cst_15 = arith.constant dense<0.000000e+00> : vector<16x32xf32>
    %17 = tpu.matmul %15, %16, %cst_15 {dimension_numbers = #tpu.dot_dimension_numbers<[1], [0], [0], [1], [0, 0, 1, 1], [], []>} : vector<16x16xbf16>, vector<16x32xbf16>, vector<16x32xf32> -> vector<16x32xf32>
    %18 = arith.truncf %17 : vector<16x32xf32> to vector<16x32xbf16>
    %cst_16 = arith.constant dense<0.000000e+00> : vector<16x32xf32>
    %19 = tpu.matmul %1, %18, %cst_16 {dimension_numbers = #tpu.dot_dimension_numbers<[1], [0], [0], [1], [0, 0, 1, 1], [], []>} : vector<16x16xbf16>, vector<16x32xbf16>, vector<16x32xf32> -> vector<16x32xf32>
    %c1 = arith.constant 1 : index
    %c0_17 = arith.constant 0 : index
    %20 = vector.load %arg5[%c1, %c0_17] : memref<8x256xf32, #tpu.memory_space<vmem>>, vector<1x32xf32>
    %21 = vector.broadcast %20 : vector<1x32xf32> to vector<16x32xf32>
    %22 = arith.addf %19, %21 : vector<16x32xf32>
    %23 = arith.truncf %22 : vector<16x32xf32> to vector<16x32xbf16>
    %c32 = arith.constant 32 : index
    %c0_18 = arith.constant 0 : index
    %24 = vector.load %arg4[%c32, %c0_18] : memref<560x256xbf16, #tpu.memory_space<vmem>>, vector<32x32xbf16>
    %cst_19 = arith.constant dense<0.000000e+00> : vector<16x32xf32>
    %25 = tpu.matmul %23, %24, %cst_19 {dimension_numbers = #tpu.dot_dimension_numbers<[1], [0], [0], [1], [0, 0, 1, 1], [], []>} : vector<16x32xbf16>, vector<32x32xbf16>, vector<16x32xf32> -> vector<16x32xf32>
    %26 = arith.truncf %25 : vector<16x32xf32> to vector<16x32xbf16>
    %cst_20 = arith.constant dense<0.000000e+00> : vector<16x32xf32>
    %27 = tpu.matmul %1, %26, %cst_20 {dimension_numbers = #tpu.dot_dimension_numbers<[1], [0], [0], [1], [0, 0, 1, 1], [], []>} : vector<16x16xbf16>, vector<16x32xbf16>, vector<16x32xf32> -> vector<16x32xf32>
    %c2 = arith.constant 2 : index
    %c0_21 = arith.constant 0 : index
    %28 = vector.load %arg5[%c2, %c0_21] : memref<8x256xf32, #tpu.memory_space<vmem>>, vector<1x32xf32>
    %29 = vector.broadcast %28 : vector<1x32xf32> to vector<16x32xf32>
    %30 = arith.addf %27, %29 : vector<16x32xf32>
    %cst_22 = arith.constant dense<0.000000e+00> : vector<32xf32>
    %31 = vector.multi_reduction <add>, %30, %cst_22 [0] : vector<16x32xf32> to vector<32xf32>
    %32 = vector.shape_cast %31 : vector<32xf32> to vector<1x32xf32>
    %cst_23 = arith.constant 1.600000e+01 : f32
    %33 = vector.broadcast %cst_23 : f32 to vector<1x32xf32>
    %34 = arith.divf %32, %33 : vector<1x32xf32>
    %35 = arith.truncf %34 : vector<1x32xf32> to vector<1x32xbf16>
    %c64 = arith.constant 64 : index
    %c0_24 = arith.constant 0 : index
    %36 = vector.load %arg4[%c64, %c0_24] : memref<560x256xbf16, #tpu.memory_space<vmem>>, vector<32x128xbf16>
    %cst_25 = arith.constant dense<0.000000e+00> : vector<1x128xf32>
    %37 = tpu.matmul %35, %36, %cst_25 {dimension_numbers = #tpu.dot_dimension_numbers<[1], [0], [0], [1], [0, 0, 1, 1], [], []>} : vector<1x32xbf16>, vector<32x128xbf16>, vector<1x128xf32> -> vector<1x128xf32>
    %c96 = arith.constant 96 : index
    %c0_26 = arith.constant 0 : index
    %38 = vector.load %arg4[%c96, %c0_26] : memref<560x256xbf16, #tpu.memory_space<vmem>>, vector<8x64xbf16>
    %cst_27 = arith.constant dense<0.000000e+00> : vector<2x64xf32>
    %39 = tpu.matmul %5, %38, %cst_27 {dimension_numbers = #tpu.dot_dimension_numbers<[1], [0], [0], [1], [0, 0, 1, 1], [], []>} : vector<2x8xbf16>, vector<8x64xbf16>, vector<2x64xf32> -> vector<2x64xf32>
    %c3 = arith.constant 3 : index
    %c0_28 = arith.constant 0 : index
    %40 = vector.load %arg5[%c3, %c0_28] : memref<8x256xf32, #tpu.memory_space<vmem>>, vector<1x64xf32>
    %41 = vector.broadcast %40 : vector<1x64xf32> to vector<2x64xf32>
    %42 = arith.addf %39, %41 : vector<2x64xf32>
    %cst_29 = arith.constant 0.000000e+00 : f32
    %43 = vector.broadcast %cst_29 : f32 to vector<2x64xf32>
    %44 = arith.maximumf %42, %43 : vector<2x64xf32>
    %45 = arith.truncf %44 : vector<2x64xf32> to vector<2x64xbf16>
    %c112 = arith.constant 112 : index
    %c0_30 = arith.constant 0 : index
    %46 = vector.load %arg4[%c112, %c0_30] : memref<560x256xbf16, #tpu.memory_space<vmem>>, vector<64x128xbf16>
    %cst_31 = arith.constant dense<0.000000e+00> : vector<2x128xf32>
    %47 = tpu.matmul %45, %46, %cst_31 {dimension_numbers = #tpu.dot_dimension_numbers<[1], [0], [0], [1], [0, 0, 1, 1], [], []>} : vector<2x64xbf16>, vector<64x128xbf16>, vector<2x128xf32> -> vector<2x128xf32>
    %c4 = arith.constant 4 : index
    %c0_32 = arith.constant 0 : index
    %48 = vector.load %arg5[%c4, %c0_32] : memref<8x256xf32, #tpu.memory_space<vmem>>, vector<1x128xf32>
    %49 = vector.broadcast %48 : vector<1x128xf32> to vector<2x128xf32>
    %50 = arith.addf %47, %49 : vector<2x128xf32>
    %cst_33 = arith.constant 0.000000e+00 : f32
    %51 = vector.broadcast %cst_33 : f32 to vector<2x128xf32>
    %52 = arith.maximumf %50, %51 : vector<2x128xf32>
    %53 = arith.truncf %52 : vector<2x128xf32> to vector<2x128xbf16>
    %c176 = arith.constant 176 : index
    %c0_34 = arith.constant 0 : index
    %54 = vector.load %arg4[%c176, %c0_34] : memref<560x256xbf16, #tpu.memory_space<vmem>>, vector<128x256xbf16>
    %cst_35 = arith.constant dense<0.000000e+00> : vector<2x256xf32>
    %55 = tpu.matmul %53, %54, %cst_35 {dimension_numbers = #tpu.dot_dimension_numbers<[1], [0], [0], [1], [0, 0, 1, 1], [], []>} : vector<2x128xbf16>, vector<128x256xbf16>, vector<2x256xf32> -> vector<2x256xf32>
    %c5 = arith.constant 5 : index
    %c0_36 = arith.constant 0 : index
    %56 = vector.load %arg5[%c5, %c0_36] : memref<8x256xf32, #tpu.memory_space<vmem>>, vector<1x256xf32>
    %57 = vector.broadcast %56 : vector<1x256xf32> to vector<2x256xf32>
    %58 = arith.addf %55, %57 : vector<2x256xf32>
    %cst_37 = arith.constant 0.000000e+00 : f32
    %59 = vector.broadcast %cst_37 : f32 to vector<2x256xf32>
    %60 = arith.maximumf %58, %59 : vector<2x256xf32>
    %61 = arith.truncf %60 : vector<2x256xf32> to vector<2x256xbf16>
    %c304 = arith.constant 304 : index
    %c0_38 = arith.constant 0 : index
    %62 = vector.load %arg4[%c304, %c0_38] : memref<560x256xbf16, #tpu.memory_space<vmem>>, vector<256x128xbf16>
    %cst_39 = arith.constant dense<0.000000e+00> : vector<2x128xf32>
    %63 = tpu.matmul %61, %62, %cst_39 {dimension_numbers = #tpu.dot_dimension_numbers<[1], [0], [0], [1], [0, 0, 1, 1], [], []>} : vector<2x256xbf16>, vector<256x128xbf16>, vector<2x128xf32> -> vector<2x128xf32>
    %64 = vector.broadcast %37 : vector<1x128xf32> to vector<2x128xf32>
    %65 = arith.addf %63, %64 : vector<2x128xf32>
    %c6 = arith.constant 6 : index
    %c0_40 = arith.constant 0 : index
    %66 = vector.load %arg5[%c6, %c0_40] : memref<8x256xf32, #tpu.memory_space<vmem>>, vector<1x128xf32>
    %67 = vector.broadcast %66 : vector<1x128xf32> to vector<2x128xf32>
    %68 = arith.addf %65, %67 : vector<2x128xf32>
    %cst_41 = arith.constant 0.000000e+00 : f32
    %69 = vector.broadcast %cst_41 : f32 to vector<2x128xf32>
    %70 = arith.maximumf %68, %69 : vector<2x128xf32>
    %c0_42 = arith.constant 0 : index
    %c0_43 = arith.constant 0 : index
    %c0_44 = arith.constant 0 : index
    %71 = vector.load %arg6[%c0_42, %c0_43, %c0_44] : memref<1x2x128xf32, #tpu.memory_space<vmem>>, vector<1x2x128xf32>
    %72 = vector.shape_cast %71 : vector<1x2x128xf32> to vector<2x128xf32>
    %73 = vector.shape_cast %70 : vector<2x128xf32> to vector<1x2x128xf32>
    tpu.vector_store %arg6[%c0_42, %c0_43, %c0_44], %73 {strides = array<i32>} : memref<1x2x128xf32, #tpu.memory_space<vmem>>, vector<1x2x128xf32>,
    return
  }
  func.func @transform_0(%arg0: i32) -> (i32, i32, i32) {
    %c0_i32 = arith.constant 0 : i32
    %c0_i32_0 = arith.constant 0 : i32
    %c0_i32_1 = arith.constant 0 : i32
    return %arg0, %c0_i32, %c0_i32_0 : i32, i32, i32
  }
  func.func @transform_1(%arg0: i32) -> (i32, i32, i32) {
    %c0_i32 = arith.constant 0 : i32
    %c0_i32_0 = arith.constant 0 : i32
    %c0_i32_1 = arith.constant 0 : i32
    return %arg0, %c0_i32, %c0_i32_0 : i32, i32, i32
  }
  func.func @transform_2(%arg0: i32) -> (i32, i32, i32) {
    %c0_i32 = arith.constant 0 : i32
    %c0_i32_0 = arith.constant 0 : i32
    %c0_i32_1 = arith.constant 0 : i32
    return %arg0, %c0_i32, %c0_i32_0 : i32, i32, i32
  }
  func.func @transform_3(%arg0: i32) -> (i32, i32) {
    %c0_i32 = arith.constant 0 : i32
    %c0_i32_0 = arith.constant 0 : i32
    %c0_i32_1 = arith.constant 0 : i32
    return %c0_i32, %c0_i32_0 : i32, i32
  }
  func.func @transform_4(%arg0: i32) -> (i32, i32) {
    %c0_i32 = arith.constant 0 : i32
    %c0_i32_0 = arith.constant 0 : i32
    %c0_i32_1 = arith.constant 0 : i32
    return %c0_i32, %c0_i32_0 : i32, i32
  }
  func.func @transform_5(%arg0: i32) -> (i32, i32, i32) {
    %c0_i32 = arith.constant 0 : i32
    %c0_i32_0 = arith.constant 0 : i32
    %c0_i32_1 = arith.constant 0 : i32
    return %arg0, %c0_i32, %c0_i32_0 : i32, i32, i32
  }
}

</mosaic_0001>

<bundles_post_ra>
// kernel: tpu_custom_call.1
= control target key start
LH: loop header
LB: loop body
LE: loop exit
PB: predicated region body
PF: predicated region fallthrough
CT: control target
= control target key end

     0   :  { %10 = vsyncpa [#allocation3], 0  ;;  %s1637_s0 = inlined_call_operand.vmem [shape: bf16[8,16,16], index: 0, kind: input, shape index: {}]   ;;  %s1638_s1 = inlined_call_operand.vmem [shape: bf16[8,16,4], index: 1, kind: input, shape index: {}]   ;;  %s1639_s2 = inlined_call_operand.hbm [shape: bf16[8,2,8], index: 2, kind: input, shape index: {}]   ;;  %s1640_s3 = inlined_call_operand.hbm [shape: bf16[560,256], index: 3, kind: input, shape index: {}]   ;;  %s1641_s4 = inlined_call_operand.vmem [shape: f32[8,256], index: 4, kind: input, shape index: {}]   ;;  %s1642_s5 = inlined_call_operand.hbm [shape: f32[8,2,128], index: 5, kind: output, shape index: {}]  }
   0x1   :  { %12 = vsyncpa [#allocation3 + $0x1], 0 }
   0x2   :  { %13 = vsyncpa [#allocation6], 0 }
   0x3   :  { %14 = vsyncpa [#allocation4], 0 }
   0x4   :  { %16 = vsyncpa [#allocation4 + $0x1], 0  ;;  %s1454_s18 = smov 0   ;;  %s1456_s19 = smov 0  }
   0x5   :  { %s1458_s20 = smov 0   ;;  %s1460_s21 = smov 0  }
   0x6 LB: > { %s184_s24 = sshll.u32 %s1640_s3, 4  ;;  %s1478_s25 = sadd.s32 4294967295, %s1418_s21   ;;  %s1418_s21 = sphi %s1460_s21, %s1651_s21   ;;  %s1414_s20 = sphi %s1458_s20, %s1650_s20   ;;  %s1410_s19 = sphi %s1456_s19, %s1649_s19   ;;  %s1406_s18 = sphi %s1454_s18, %s1648_s18   ;;  %s185_s24 = int_to_ptr.hbm [resolvable:$true] %s184_s24 }
   0x7   : > { %p985_p0 = scmp.ge.s32.totalorder %s1418_s21, 1  ;;  %p95_p1 = scmp.eq.s32.totalorder %s1478_s25, 0 }
   0x8   : > { %p173_p2 = scmp.lt.s32.totalorder %s1418_s21, 9  ;;  %s1420_s27 = smov [#allocation5]  }
   0x9   : > { %s186_s28 = sshll.u32 %s1420_s27, 4  ;;  %s1421_s29 = smov 128   ;;  %s187_s28 = int_to_ptr.vmem [resolvable:$true] %s186_s28 }
   0xa   : > { %p1483_p3 = pnand %p985_p0, %p173_p2  ;;  %s1422_s30 = smov 8  }
   0xb   : > { %s984_s6 = sadd.s32 4294967294, %s1418_s21   ;;  %s1493_s7 = sadd.s32 1, %s1418_s21  }
   0xc   : > { %p1234_p4 = pneg %p1483_p3  ;;  %s81_s8 = sadd.s32 1, %s1414_s20 }
   0xd   : > { %s78_s9 = ssub.s32 %s1418_s21, %s1493_s7  ;;  %p88_p6 = scmp.ne.s32.totalorder %s1414_s20, %s1410_s19 }
   0xe   : > { %p1235_p5 = pnand %p1234_p4, %p95_p1  ;;  %p79_p7 = scmp.eq.s32.totalorder %s78_s9, 0 }
   0xf   : > { %p89_p8 = scmp.eq.s32.totalorder %s1418_s21, 0  ;;  %p94_p9 = scmp.ne.s32.totalorder %s1410_s19, %s1406_s18 }
  0x10   : > { %1237 = dma.hbm_to_vmem [thread:$0]  (!%p1235_p5), %s185_s24, 8960, %s187_s28, [#allocation6], %s1421_s29, %s1421_s29, %s1422_s30  }
  0x11   : > { %p160_p10 = scmp.eq.s32.totalorder %s1478_s25, 7  ;;  %p1509_p11 = por %p95_p1, %p94_p9 }
  0x12   : > { %s1505_s10 = scalar_select %p79_p7, %s1414_s20, %s81_s8  }
  0x13   : > { %p1513_p12 = por %p160_p10, %p88_p6  ;;  %p166_p13 = scmp.eq.s32.totalorder %s984_s6, 7 }
  0x14   : > { %p90_p0 = por %p89_p8, %p88_p6  ;;  %s219_s13 = sand.u32 1, %s1414_s20  }
  0x15   : > { %p1518_p2 = por %p166_p13, %p94_p9  ;;  %p1247_p4 = scmp.lt.s32.totalorder %s1418_s21, 8 }
  0x16   : > { %s225_s17 = scalar_lea.hbm %s1639_s2, %s1418_s21  ;;  %s222_s23 = scalar_lea.vmem [#allocation2], %s219_s13 }
  0x17   : > { %s227_s22 = sshll.u32 %s225_s17, 4  ;;  %s229_s24 = sshll.u32 %s222_s23, 4  ;;  %s228_s22 = int_to_ptr.hbm [resolvable:$true] %s227_s22  ;;  %s230_s24 = int_to_ptr.vmem [resolvable:$true] %s229_s24 }
  0x18   : > { %p1527_p5 = pnand %p1247_p4, %p90_p0  ;;  %s220_s28 = scalar_lea.sflag [#allocation3], %s219_s13 }
  0x19   : > { %s1318_s29 = sshra.s32 %s228_s22, 4  ;;  %s1325_s9 = scalar_lea.hbm %s1639_s2, 8  ;;  %s1319_s29 = int_to_ptr.hbm [resolvable:$true] %s1318_s29 }
  0x1a   : > { %s1320_s30 = scalar_lea.hbm %s1319_s29, 1  ;;  %p1322_p7 = pneg %p1527_p5 }
  0x1b   : > { %p1321_p6 = scmp.ne.s32.totalorder %s1319_s29, %s1320_s30  ;;  %p1326_p10 = scmp.lt.s32.totalorder %s1319_s29, %s1639_s2 }
  0x1c   : > { %p1327_p13 = scmp.lt.s32.totalorder %s1325_s9, %s1320_s30 }
  0x1d   : > { %p1323_p8 = pnand %p1322_p7, %p1321_p6 }
  0x1e   : > { %p1328_p0 = por %p1327_p13, %p1326_p10 }
  0x1f   : > { %p1324_p9 = pneg %p1323_p8 }
  0x21   : > { %p1329_p4 = pnand %p1328_p0, %p1324_p9 }
  0x23   : > { %1332 = shalt.err (!%p1329_p4)
}
  0x24   : > { %1241 = dma.hbm_to_vmem [thread:$0]  (!%p1527_p5), %s228_s22, 16, %s230_s24, %s220_s28  }
  0x25   : > { %238 = sbr.rel (%p1483_p3) target bundleno = 1204 (0x4b4), region = 40  ;;  %s1544_s13 = sand.u32 (!%p1483_p3), 1, %s1410_s19  }
  0x26   : > { %s241_s17 = scalar_lea.sflag (!%p1483_p3), [#allocation3], %s1544_s13  ;;  %s243_s23 = scalar_lea.vmem (!%p1483_p3), [#allocation2], %s1544_s13 }
  0x2a   : > { %1393 = dma.done.wait (%p1509_p11), %s241_s17, 16  }
  0x2b   : > { %1395 = vsyncadd (%p1509_p11), %s241_s17, 4294967280 }
  0x2c   : > { %1397 = dma.done.wait (%p95_p1), [#allocation6], 8960  }
  0x2d   : > { %1399 = vsyncadd (%p95_p1), [#allocation6], 4294958336  ;;  %p285_p3 = scmp.lt.s32.totalorder %s1478_s25, 7  ;;  %vm311_vm0 = vcmask 1041408   ;;  %v301_v0 = vld [vmem:[#allocation5] sm:$0x3] }
  0x2e   : > { %v313_v1 = vsel %vm311_vm0, %v301_v0, 0  ;;  %vm307_vm1 = vcmask 31744   ;;  %vm336_vm2 = vcmask 130048   ;;  %v1007_v7 = vld [vmem:[#allocation5 + $0x10] sm:$0xf]  ;;  %vm505_vm3 = vcmask 1043456  }
  0x2f   : > { %s286_s26 = scalar_select %p285_p3, %s1478_s25, 7  ;;  %322 = vmatpush.bf16.msra.mxu0 %v313_v1  ;;  %v1185_v8 = vld [vmem:[#allocation5 + $0x14] sm:$0xf0]  ;;  %v330_v11 = vld [vmem:[%s1641_s4] ss:$0 sm:$0xff]  ;;  %vm501_vm4 = vcmask 64512  }
  0x30   : > { %v1008_v9 = vor.u32 %v1185_v8, %v1007_v7  ;;  %v499_v19 = vld [vmem:[#allocation5 + $0x60] sm:$0xf]  ;;  %v300_v23 = vld [vmem:[%s243_s23] sm:$0x1]  ;;  %v1017_v24 = vld [vmem:[#allocation5 + $0x30] sm:$0xf] }
  0x31   : > { %s1181_s22 = sshll.u32 %s286_s26, 3  ;;  %v507_v22 = vsel %vm505_vm3, %v499_v19, 0  ;;  %v1187_v25 = vld [vmem:[#allocation5 + $0x34] sm:$0xf0]  ;;  %v1013_v27 = vld [vmem:[#allocation5 + $0x20] sm:$0xf] }
  0x32   : > { %s294_s28 = scalar_lea.vmem %s1638_s1, %s1181_s22  ;;  %s289_s30 = scalar_lea.vmem %s1637_s0, %s1181_s22  ;;  %375 = vmatpush.bf16.msra.mxu2 %v1008_v9  ;;  %v1018_v26 = vor.u32 %v1187_v25, %v1017_v24  ;;  %v1186_v28 = vld [vmem:[#allocation5 + $0x24] sm:$0xf0]  ;;  %v1045_v30 = vld [vmem:[#allocation5 + $0xa0] sm:$0xf]  ;;  %v1041_v32 = vld [vmem:[#allocation5 + $0x90] sm:$0xf] }
  0x33   : > { %v1184_v2 = vld [vmem:[%s294_s28] sm:$0xff]  ;;  %v1014_v29 = vor.u32 %v1186_v28, %v1013_v27  ;;  %v1193_v31 = vld [vmem:[#allocation5 + $0xa4] sm:$0xf0]  ;;  %v1192_v34 = vld [vmem:[#allocation5 + $0x94] sm:$0xf0]  ;;  %vm415_vm5 = vcmask 261120  }
  0x34   : > { %999 = vmatmul.msk.bf16.vlgmr.msra.gmra.mxu0 %vm307_vm1, %v1184_v2  ;;  %v1564_v6 = vld [vmem:[%s289_s30] sm:$0xff]  ;;  %v1046_v33 = vor.u32 %v1193_v31, %v1045_v30  ;;  %v1042_v35 = vor.u32 %v1192_v34, %v1041_v32  ;;  %v1191_v37 = vld [vmem:[#allocation5 + $0x84] sm:$0xf0]  ;;  %v1033_v38 = vld [vmem:[#allocation5 + $0x70] sm:$0xf]  ;;  %vm557_vm6 = vcmask 523264  }
  0x35   : > { %425 = vmatpush.bf16.msrb.mxu0 %v1018_v26  ;;  %v1037_v36 = vld [vmem:[#allocation5 + $0x80] sm:$0xf]  ;;  %v1190_v40 = vld [vmem:[#allocation5 + $0x74] sm:$0xf0]  ;;  %v383_v43 = vld [vmem:[%s1641_s4 + $0x1] ss:$0 sm:$0xff] }
  0x36   : > { %v1038_v39 = vor.u32 %v1191_v37, %v1037_v36  ;;  %v1034_v41 = vor.u32 %v1190_v40, %v1033_v38  ;;  %v500_v48 = vld [vmem:[%s1641_s4 + $0x3] ss:$0 sm:$0xff]  ;;  %v1209_v56 = vld [vmem:[#allocation5 + $0x124] sm:$0xf0]  ;;  %v1099_v60 = vld [vmem:[#allocation5 + $0x110] sm:$0xf] }
  0x37   : > { %v1107_v55 = vld [vmem:[#allocation5 + $0x120] sm:$0xf]  ;;  %v1207_v61 = vld [vmem:[#allocation5 + $0x114] sm:$0xf0]  ;;  %v1205_v0 = vld [vmem:[#allocation5 + $0x104] sm:$0xf0] }
  0x38   : > { %v1108_v58 = vor.u32 %v1209_v56, %v1107_v55  ;;  %v1100_v62 = vor.u32 %v1207_v61, %v1099_v60  ;;  %v1091_v63 = vld [vmem:[#allocation5 + $0x100] sm:$0xf]  ;;  %v1201_v8 = vld [vmem:[#allocation5 + $0xe4] sm:$0xf0]  ;;  %v1195_v19 = vld [vmem:[#allocation5 + $0xb4] sm:$0xf0] }
  0x39   : > { %426 = vmatpush.bf16.msrb.mxu0 %v1014_v29  ;;  %v1092_v1 = vor.u32 %v1205_v0, %v1091_v63  ;;  %v1075_v7 = vld [vmem:[#allocation5 + $0xe0] sm:$0xf]  ;;  %v1217_v24 = vld [vmem:[#allocation5 + $0x1a4] sm:$0xf0]  ;;  %v1139_v26 = vld [vmem:[#allocation5 + $0x190] sm:$0xf] }
  0x3a   : > { %v1076_v9 = vor.u32 %v1201_v8, %v1075_v7  ;;  %v1216_v27 = vld [vmem:[#allocation5 + $0x194] sm:$0xf0]  ;;  %v1027_v29 = vld [vmem:[#allocation5 + $0x50] sm:$0xf]  ;;  %v1135_v32 = vld [vmem:[#allocation5 + $0x180] sm:$0xf] }
  0x3b   : > { %v1140_v28 = vor.u32 %v1216_v27, %v1139_v26  ;;  %v1189_v30 = vld [vmem:[#allocation5 + $0x54] sm:$0xf0]  ;;  %v1188_v36 = vld [vmem:[#allocation5 + $0x44] sm:$0xf0]  ;;  %v1208_v38 = vld [vmem:[#allocation5 + $0x124] sm:$0xf] }
  0x3c   : > { %v1028_v31 = vor.u32 %v1189_v30, %v1027_v29  ;;  %v1202_v56 = vld [vmem:[#allocation5 + $0xf4] sm:$0xf]  ;;  %v1211_v60 = vld [vmem:[#allocation5 + $0x144] sm:$0xf0]  ;;  %v1077_v63 = vld [vmem:[#allocation5 + $0xe8] sm:$0xf0] }
  0x3d   : > { %565 = vmatpush.bf16.msra.mxu0 %v1046_v33  ;;  %v1215_v33 = vld [vmem:[#allocation5 + $0x184] sm:$0xf0]  ;;  %v1198_v7 = vld [vmem:[#allocation5 + $0xd4] sm:$0xf]  ;;  %v1069_v8 = vld [vmem:[#allocation5 + $0xd8] sm:$0xf0] }
  0x3e   : > { %492 = vmatpush.bf16.msrb.mxu2 %v1028_v31  ;;  %v1136_v34 = vor.u32 %v1215_v33, %v1135_v32  ;;  %v1175_v27 = vld [vmem:[#allocation5 + $0x220] sm:$0xf]  ;;  %v1171_v31 = vld [vmem:[#allocation5 + $0x210] sm:$0xf]  ;;  %v1224_v32 = vld [vmem:[#allocation5 + $0x214] sm:$0xf0] }
  0x3f   : > { %s990_s11 = sshll.u32 %s1544_s13, 1  ;;  %s1178_s29 = sshll.u32 %s1478_s25, 1 }
  0x40   : > { %s879_s8 = scalar_lea.hbm %s1642_s5, %s1178_s29  ;;  %s284_s16 = scalar_lea.vmem [#allocation7], %s990_s11 }
  0x41   : > { %566 = vmatpush.bf16.msra.mxu0 %v1042_v35  ;;  %v1023_v35 = vld [vmem:[#allocation5 + $0x40] sm:$0xf]  ;;  %s881_s17 = sshll.u32 %s284_s16, 4  ;;  %s883_s23 = sshll.u32 %s879_s8, 4  ;;  %s882_s17 = int_to_ptr.vmem [resolvable:$true] %s881_s17  ;;  %s884_s23 = int_to_ptr.hbm [resolvable:$true] %s883_s23 }
  0x42   : > { %v1024_v37 = vor.u32 %v1188_v36, %v1023_v35  ;;  %s869_s25 = scalar_lea.sflag [#allocation4], %s1544_s13  ;;  %s1362_s26 = sshra.s32 %s884_s23, 4  ;;  %s1363_s26 = int_to_ptr.hbm [resolvable:$true] %s1362_s26 }
  0x43   : > { %s1364_s22 = scalar_lea.hbm %s1363_s26, 2  ;;  %s1368_s28 = scalar_lea.hbm %s1642_s5, 16 }
  0x44   : > { %493 = vmatpush.bf16.msrb.mxu2 %v1024_v37  ;;  %p1365_p1 = scmp.ne.s32.totalorder %s1363_s26, %s1364_s22  ;;  %p1369_p6 = scmp.lt.s32.totalorder %s1363_s26, %s1642_s5 }
  0x45   : > { %567 = vmatpush.bf16.msra.mxu0 %v1038_v39  ;;  %v1109_v39 = vld [vmem:[#allocation5 + $0x128] sm:$0xf0]  ;;  %p1370_p7 = scmp.lt.s32.totalorder %s1368_s28, %s1364_s22 }
  0x46   : > { %v1112_v40 = vor.u32 %v1208_v38, %v1109_v39  ;;  %v1048_v39 = vld [vmem:[%s1641_s4 + $0x5] ss:$8 sm:$0x3]  ;;  %p1366_p11 = pnand %p1365_p1, %p1513_p12 }
  0x47   : > { %p1371_p8 = por %p1370_p7, %p1369_p6 }
  0x48   : > { %p1367_p5 = pneg %p1366_p11 }
  0x49   : > { %568 = vmatpush.bf16.msra.mxu0 %v1034_v41  ;;  %v1131_v41 = vld [vmem:[#allocation5 + $0x170] sm:$0xf] }
  0x4a   : > { %p1372_p9 = pnand %p1371_p8, %p1367_p5 }
  0xb1   : > { %v324_v3 = vpop.f32.mrf.mxu0 }
  0xb9   : > { %v326_v4 = vpop.f32.mrf.mxu0 }
  0xba   : > { %v329_v5 = vpack.c.bf16 %v326_v4, %v324_v3  ;;  %v1083_v3 = vld [vmem:[#allocation5 + $0xf0] sm:$0xf]  ;;  %v1203_v4 = vld [vmem:[#allocation5 + $0xf4] sm:$0xf0] }
  0xbc   : > { %347 = vmatpush.bf16.msra.mxu1 %v329_v5  ;;  %v1084_v5 = vor.u32 %v1203_v4, %v1083_v3  ;;  %v1210_v3 = vld [vmem:[#allocation5 + $0x134] sm:$0xf0] }
  0xbf   : > { %1004 = vmatmul.msk.bf16.vlgmr.msra.gmra.mxu1 %vm336_vm2, %v1564_v6 }
 0x13c   : > { %v349_v10 = vpop.f32.mrf.mxu1 }
 0x13d   : > { %v350_v12 = vadd.f32 %v349_v10, %v330_v11 }
 0x13f   : > { %v354_v15 = vmax.f32 %v350_v12, 0.0  ;;  %v1199_v12 = vld [vmem:[#allocation5 + $0xd4] sm:$0xf0] }
 0x144   : > { %v351_v13 = vpop.f32.mrf.mxu1 }
 0x145   : > { %v352_v14 = vadd.f32 %v351_v13, %v330_v11  ;;  %v1067_v11 = vld [vmem:[#allocation5 + $0xd0] sm:$0xf] }
 0x146   : > { %v1068_v13 = vor.u32 %v1199_v12, %v1067_v11  ;;  %v1196_v12 = vld [vmem:[#allocation5 + $0xc4] sm:$0xf] }
 0x147   : > { %v355_v16 = vmax.f32 %v352_v14, 0.0  ;;  %v1059_v14 = vld [vmem:[#allocation5 + $0xc0] sm:$0xf] }
 0x149   : > { %v356_v17 = vpack.c.bf16 %v355_v16, %v354_v15  ;;  %v1197_v15 = vld [vmem:[#allocation5 + $0xc4] sm:$0xf0] }
 0x14b   : > { %1009 = vmatmul.msk.bf16.vlgmr.msra.gmra.mxu2 %vm336_vm2, %v356_v17  ;;  %v1060_v17 = vor.u32 %v1197_v15, %v1059_v14  ;;  %v1053_v15 = vld [vmem:[#allocation5 + $0xb8] sm:$0xf0] }
 0x14c   : > { %692 = vmatpush.bf16.msra.mxu2 %v1112_v40 }
 0x1ce   : > { %v377_v18 = vpop.f32.mrf.mxu2 }
 0x1d6   : > { %v379_v20 = vpop.f32.mrf.mxu2 }
 0x1d7   : > { %v382_v21 = vpack.c.bf16 %v379_v20, %v377_v18  ;;  %v1051_v18 = vld [vmem:[#allocation5 + $0xb0] sm:$0xf] }
 0x1d9   : > { %391 = vmatpush.bf16.msra.mxu3 %v382_v21  ;;  %v1052_v21 = vor.u32 %v1195_v19, %v1051_v18 }
 0x1dc   : > { %1010 = vmatmul.msk.bf16.vlgmr.msra.gmra.mxu3 %vm336_vm2, %v1564_v6 }
 0x1dd   : > { %516 = vmatpush.bf16.msrb.mxu3 %v507_v22 }
 0x1ec   : > { %1030 = vmatmul.msk.bf16.vlgmr.msrb.gmra.mxu3 %vm501_vm4, %v300_v23  ;;  %v1143_v23 = vld [vmem:[#allocation5 + $0x1a0] sm:$0xf] }
 0x1ed   : > { %v1144_v25 = vor.u32 %v1217_v24, %v1143_v23 }
 0x1ef   : > { %838 = vmatpush.bf16.msra.mxu3 %v1144_v25 }
 0x1f3   : > { %839 = vmatpush.bf16.msra.mxu3 %v1140_v28  ;;  %v1225_v28 = vld [vmem:[#allocation5 + $0x224] sm:$0xf0] }
 0x1f4   : > { %v1176_v30 = vor.u32 %v1225_v28, %v1175_v27 }
 0x1f7   : > { %840 = vmatpush.bf16.msra.mxu3 %v1136_v34  ;;  %v1172_v34 = vor.u32 %v1224_v32, %v1171_v31 }
 0x25f   : > { %v393_v42 = vpop.f32.mrf.mxu3 }
 0x260   : > { %v394_v45 = vadd.f32 %v393_v42, %v383_v43  ;;  %v1214_v42 = vld [vmem:[#allocation5 + $0x174] sm:$0xf0] }
 0x267   : > { %v395_v44 = vpop.f32.mrf.mxu3 }
 0x268   : > { %v396_v46 = vadd.f32 %v395_v44, %v383_v43  ;;  %v1132_v43 = vor.u32 %v1214_v42, %v1131_v41  ;;  %v1206_v44 = vld [vmem:[#allocation5 + $0x114] sm:$0xf]  ;;  %v595_v42 = vperm.slane %v1048_v39, 0 }
 0x26a   : > { %v398_v47 = vpack.c.bf16 %v396_v46, %v394_v45  ;;  %v1101_v45 = vld [vmem:[#allocation5 + $0x118] sm:$0xf0]  ;;  %841 = vmatpush.bf16.msra.mxu3 %v1132_v43 }
 0x26b   : > { %v1104_v46 = vor.u32 %v1206_v44, %v1101_v45 }
 0x26c   : > { %1019 = vmatmul.msk.bf16.vlgmr.msrb.gmra.mxu0 %vm415_vm5, %v398_v47  ;;  %v1127_v47 = vld [vmem:[#allocation5 + $0x160] sm:$0xf] }
 0x26d   : > { %693 = vmatpush.bf16.msra.mxu2 %v1104_v46  ;;  %851 = vmatpush.bf16.msrb.mxu0 %v1176_v30 }
 0x26f   : > { %v518_v49 = vpop.f32.mrf.mxu3 }
 0x270   : > { %v519_v50 = vadd.f32 %v518_v49, %v500_v48  ;;  %v1213_v48 = vld [vmem:[#allocation5 + $0x164] sm:$0xf0] }
 0x271   : > { %v1128_v49 = vor.u32 %v1213_v48, %v1127_v47  ;;  %852 = vmatpush.bf16.msrb.mxu0 %v1172_v34 }
 0x272   : > { %v522_v51 = vmax.f32 %v519_v50, 0.0  ;;  %v1204_v50 = vld [vmem:[#allocation5 + $0x104] sm:$0xf] }
 0x273   : > { %842 = vmatpush.bf16.msra.mxu3 %v1128_v49 }
 0x274   : > { %v523_v53 = vpack.c.bf16 %v522_v51, %v522_v51  ;;  %v1093_v51 = vld [vmem:[#allocation5 + $0x108] sm:$0xf0] }
 0x277   : > { %v520_v52 = vpop.f32.mrf.mxu3 }
 0x278   : > { %v1096_v52 = vor.u32 %v1204_v50, %v1093_v51  ;;  %v1167_v50 = vld [vmem:[#allocation5 + $0x200] sm:$0xf]  ;;  %v1223_v51 = vld [vmem:[#allocation5 + $0x204] sm:$0xf0] }
 0x27a   : > { %694 = vmatpush.bf16.msra.mxu2 %v1096_v52  ;;  %v1168_v52 = vor.u32 %v1223_v51, %v1167_v50 }
 0x27c   : > { %1047 = vmatmul.msk.bf16.vlgmr.msra.gmra.mxu0 %vm557_vm6, %v523_v53  ;;  %v1123_v53 = vld [vmem:[#allocation5 + $0x150] sm:$0xf] }
 0x27d   : > { %853 = vmatpush.bf16.msrb.mxu0 %v1168_v52 }
 0x2e9   : > { %v428_v54 = vpop.f32.mrf.mxu0 }
 0x2f1   : > { %v430_v57 = vpop.f32.mrf.mxu0 }
 0x2f2   : > { %v433_v59 = vpack.c.bf16 %v430_v57, %v428_v54  ;;  %v1212_v54 = vld [vmem:[#allocation5 + $0x154] sm:$0xf0]  ;;  %v1085_v57 = vld [vmem:[#allocation5 + $0xf8] sm:$0xf0] }
 0x2f3   : > { %v1124_v55 = vor.u32 %v1212_v54, %v1123_v53  ;;  %v1163_v53 = vld [vmem:[#allocation5 + $0x1f0] sm:$0xf]  ;;  %v1222_v54 = vld [vmem:[#allocation5 + $0x1f4] sm:$0xf0] }
 0x2f4   : > { %442 = vmatpush.bf16.msrb.mxu1 %v433_v59  ;;  %v1119_v59 = vld [vmem:[#allocation5 + $0x140] sm:$0xf] }
 0x2f5   : > { %843 = vmatpush.bf16.msra.mxu3 %v1124_v55  ;;  %v1120_v61 = vor.u32 %v1211_v60, %v1119_v59  ;;  %v1164_v55 = vor.u32 %v1222_v54, %v1163_v53  ;;  %v1155_v59 = vld [vmem:[#allocation5 + $0x1d0] sm:$0xf]  ;;  %v1220_v60 = vld [vmem:[#allocation5 + $0x1d4] sm:$0xf0] }
 0x2f7   : > { %1020 = vmatmul.msk.bf16.vlgmr.msrb.gmra.mxu1 %vm336_vm2, %v1564_v6  ;;  %v532_v6 = vld [vmem:[%s1641_s4 + $0x4] ss:$0 sm:$0xff]  ;;  %854 = vmatpush.bf16.msrb.mxu0 %v1164_v55 }
 0x2f8   : > { %679 = vmatpush.bf16.msra.mxu1 %v1108_v58  ;;  %v1088_v58 = vor.u32 %v1202_v56, %v1085_v57  ;;  %v1159_v56 = vld [vmem:[#allocation5 + $0x1e0] sm:$0xf]  ;;  %v1221_v57 = vld [vmem:[#allocation5 + $0x1e4] sm:$0xf0] }
 0x2f9   : > { %v570_v2 = vpop.f32.mrf.mxu0  ;;  %844 = vmatpush.bf16.msra.mxu3 %v1120_v61  ;;  %v1156_v61 = vor.u32 %v1220_v60, %v1155_v59 }
 0x2fa   : > { %v571_v16 = vadd.f32 %v570_v2, %v532_v6  ;;  %695 = vmatpush.bf16.msra.mxu2 %v1088_v58  ;;  %v1115_v2 = vld [vmem:[#allocation5 + $0x130] sm:$0xf]  ;;  %v1194_v6 = vld [vmem:[#allocation5 + $0xb4] sm:$0xf]  ;;  %v1160_v58 = vor.u32 %v1221_v57, %v1159_v56 }
 0x2fb   : > { %v1116_v4 = vor.u32 %v1210_v3, %v1115_v2  ;;  %v1056_v18 = vor.u32 %v1194_v6, %v1053_v15 }
 0x2fc   : > { %680 = vmatpush.bf16.msra.mxu1 %v1100_v62  ;;  %v574_v20 = vmax.f32 %v571_v16, 0.0  ;;  %v1200_v62 = vld [vmem:[#allocation5 + $0xe4] sm:$0xf]  ;;  %855 = vmatpush.bf16.msrb.mxu0 %v1160_v58 }
 0x2fd   : > { %v1080_v0 = vor.u32 %v1200_v62, %v1077_v63  ;;  %845 = vmatpush.bf16.msra.mxu3 %v1116_v4  ;;  %v1151_v62 = vld [vmem:[#allocation5 + $0x1c0] sm:$0xf]  ;;  %v1219_v63 = vld [vmem:[#allocation5 + $0x1c4] sm:$0xf0] }
 0x2fe   : > { %v1588_v22 = vpack.c.bf16 %v574_v20, %v574_v20 }
 0x2ff   : > { %696 = vmatpush.bf16.msra.mxu2 %v1080_v0  ;;  %v1152_v0 = vor.u32 %v1219_v63, %v1151_v62 }
 0x300   : > { %681 = vmatpush.bf16.msra.mxu1 %v1092_v1  ;;  %v1423_v1 = vmov 16.0   ;;  %856 = vmatpush.bf16.msrb.mxu0 %v1156_v61 }
 0x301   : > { %v572_v10 = vpop.f32.mrf.mxu0  ;;  %1286 = vrcp.f32 %v1423_v1  ;;  %v1218_v1 = vld [vmem:[#allocation5 + $0x1b4] sm:$0xf0] }
 0x302   : > { %v434_v10 = vld [vmem:[%s1641_s4 + $0x2] ss:$0 sm:$0xff] }
 0x304   : > { %682 = vmatpush.bf16.msra.mxu1 %v1084_v5  ;;  %857 = vmatpush.bf16.msrb.mxu0 %v1152_v0 }
 0x307   : > { %v1287_v11 = vpop.eup %1286 }
 0x308   : > { %683 = vmatpush.bf16.msra.mxu1 %v1076_v9  ;;  %v1072_v9 = vor.u32 %v1198_v7, %v1069_v8  ;;  %vm463_vm7 = vweird.f32 %v1287_v11 }
 0x30a   : > { %697 = vmatpush.bf16.msra.mxu2 %v1072_v9  ;;  %v596_v9 = vperm.slane %v1048_v39, 1 }
 0x30c   : > { %684 = vmatpush.bf16.msra.mxu1 %v1068_v13  ;;  %v1061_v13 = vld [vmem:[#allocation5 + $0xc8] sm:$0xf0] }
 0x30d   : > { %v1064_v14 = vor.u32 %v1196_v12, %v1061_v13 }
 0x30f   : > { %698 = vmatpush.bf16.msra.mxu2 %v1064_v14 }
 0x310   : > { %685 = vmatpush.bf16.msra.mxu1 %v1060_v17  ;;  %v459_v17 = vmul.f32 16.0, %v1287_v11 }
 0x312   : > { %v460_v24 = vsub.f32 1.0, %v459_v17 }
 0x313   : > { %699 = vmatpush.bf16.msra.mxu2 %v1056_v18 }
 0x314   : > { %686 = vmatpush.bf16.msra.mxu1 %v1052_v21  ;;  %v461_v29 = vmul.f32 %v1287_v11, %v460_v24 }
 0x316   : > { %v462_v36 = vadd.f32 %v1287_v11, %v461_v29 }
 0x317   : > { %687 = vmatmul.bf16.vlgmr.msra.gmra.mxu1 %v1588_v22 }
 0x318   : > { %v464_v40 = vsel %vm463_vm7, %v1287_v11, %v462_v36 }
 0x374   : > { %v444_v5 = vpop.f32.mrf.mxu1 }
 0x375   : > { %v445_v16 = vadd.f32 %v444_v5, %v434_v10 }
 0x377   : > { %v449_v21 = vsel %vm415_vm5, %v445_v16, 0.0  ;;  %v864_v16 = vld [vmem:[%s1641_s4 + $0x6] ss:$0 sm:$0xff] }
 0x37c   : > { %v446_v19 = vpop.f32.mrf.mxu1 }
 0x37d   : > { %v447_v20 = vadd.f32 %v446_v19, %v434_v10 }
 0x37f   : > { %v450_v23 = vsel %vm415_vm5, %v447_v20, 0.0 }
 0x380   : > { %v451_v25 = vadd.f32 %v450_v23, %v449_v21 }
 0x382   : > { %v452_v26 = vrot.slane %v451_v25, 4 }
 0x384   : > { %v453_v33 = vadd.f32 %v452_v26, %v451_v25 }
 0x386   : > { %v454_v35 = vrot.slane %v453_v33, 2 }
 0x388   : > { %v455_v37 = vadd.f32 %v454_v35, %v453_v33 }
 0x38a   : > { %v456_v38 = vrot.slane %v455_v37, 1 }
 0x38c   : > { %v457_v41 = vadd.f32 %v456_v38, %v455_v37 }
 0x38e   : > { %v465_v43 = vmul.f32 %v464_v40, %v457_v41 }
 0x390   : > { %v466_v44 = vpack.c.bf16 %v465_v43, %v465_v43 }
 0x392   : > { %1029 = vmatmul.msk.bf16.vlgmr.msrb.gmra.mxu2 %vm415_vm5, %v466_v44 }
 0x394   : > { %v688_v45 = vpop.f32.mrf.mxu1 }
 0x395   : > { %v689_v46 = vadd.f32 %v688_v45, %v595_v42 }
 0x397   : > { %v705_v47 = vmax.f32 %v689_v46, 0.0 }
 0x399   : > { %v707_v48 = vpack.c.bf16 %v705_v47, %v705_v47 }
 0x39b   : > { %846 = vmatmul.bf16.vlgmr.msra.gmra.mxu3 %v707_v48 }
 0x39c   : > { %v690_v49 = vpop.f32.mrf.mxu1 }
 0x3a2   : > { %700 = vmatmul.bf16.vlgmr.msra.gmra.mxu2 %v1588_v22  ;;  %v1147_v22 = vld [vmem:[#allocation5 + $0x1b0] sm:$0xf] }
 0x3a3   : > { %v1148_v2 = vor.u32 %v1218_v1, %v1147_v22 }
 0x3a5   : > { %858 = vmatpush.bf16.msrb.mxu0 %v1148_v2 }
 0x415   : > { %v495_v3 = vpop.f32.mrf.mxu2 }
 0x416   : > { %v741_v4 = vperm.slane %v495_v3, 0 }
 0x41d   : > { %v497_v8 = vpop.f32.mrf.mxu2 }
 0x41e   : > { %v847_v5 = vpop.f32.mrf.mxu3 }
 0x41f   : > { %v848_v7 = vadd.f32 %v847_v5, %v741_v4 }
 0x425   : > { %v701_v11 = vpop.f32.mrf.mxu2 }
 0x426   : > { %v849_v10 = vpop.f32.mrf.mxu3  ;;  %v702_v12 = vadd.f32 %v701_v11, %v596_v9 }
 0x428   : > { %v706_v13 = vmax.f32 %v702_v12, 0.0 }
 0x42a   : > { %v708_v6 = vpack.c.bf16 %v706_v13, %v706_v13 }
 0x42c   : > { %859 = vmatmul.bf16.vlgmr.msrb.gmra.mxu0 %v708_v6 }
 0x42d   : > { %v703_v14 = vpop.f32.mrf.mxu2 }
 0x4a9   : > { %v860_v15 = vpop.f32.mrf.mxu0 }
 0x4aa   : > { %v861_v17 = vadd.f32 %v860_v15, %v848_v7 }
 0x4ac   : > { %v865_v18 = vadd.f32 %v864_v16, %v861_v17 }
 0x4ae   : > { %v866_v19 = vmax.f32 %v865_v18, 0.0 }
 0x4b0   : > { %867 = vst [vmem:[%s284_s16] sm:$0x3] %v866_v19 }
 0x4b1   : > { %v862_v20 = vpop.f32.mrf.mxu0 }
 0x4b2   : > { %1375 = shalt.err (!%p1372_p9)
}
 0x4b3   : > { %1232 = dma.vmem_to_hbm [thread:$0]  (%p1513_p12), %s882_s17, 32, %s884_s23, %s869_s25  }
 0x4b4 PF: > { %p1249_p10 = scmp.ge.s32.totalorder %s1418_s21, 2  ;;  %s895_s13 = sand.u32 1, %s1406_s18  }
 0x4b5   : > { %s896_s30 = scalar_lea.sflag [#allocation4], %s895_s13 }
 0x4b6   : > { %p1243_p13 = pnand %p1249_p10, %p1518_p2 }
 0x4b8   : > { %p1244_p0 = pneg %p1243_p13 }
 0x4ba   : > { %1401 = dma.done.wait (%p1244_p0), %s896_s30, 32  }
 0x4bb   : > { %1403 = vsyncadd (%p1244_p0), %s896_s30, 4294967264  ;;  %p19_p4 = scmp.ge.s32.totalorder %s1493_s7, 10   ;;  %s1648_s18 = smov %s1410_s19 }
 0x4bc   : > { %s1649_s19 = smov %s1414_s20  ;;  %s1650_s20 = smov %s1505_s10 }
 0x4bd   : > { %s1651_s21 = smov %s1493_s7  ;;  %21 = sbr.rel (!%p19_p4) target bundleno = 6 (0x6), region = 96 }
 0x4c2   :  { %902 = vsyncpa [#allocation3], 1 }
 0x4c3   :  { %904 = vsyncpa [#allocation3 + $0x1], 1 }
 0x4c4   :  { %905 = vsyncpa [#allocation6], 1 }
 0x4c5   :  { %906 = vsyncpa [#allocation4], 1 }
 0x4c6   :  { %908 = vsyncpa [#allocation4 + $0x1], 1 }

</bundles_post_ra>
